<compile_context>
chip_gen: v7x
topology: tpu7x:2x2x1
jax: 0.10.0
libtpu: 0.0.40
codegen_flags: <defaults>
</compile_context>

<pallas_src>
import functools

import jax
import jax.numpy as jnp
from jax.experimental import pallas as pl
from jax.experimental.pallas import tpu as pltpu

LANE = 128              # vreg lane width: pad hidden/output feature dims to this
SUBLANE = 8             # f32 sublane granularity: batch tiles are multiples of 8
DEFAULT_BLOCK_BATCH = 2048


# ----------------------------------------------------------------------------
# Small helpers.
# ----------------------------------------------------------------------------
def _round_up(x, m):
    return ((x + m - 1) // m) * m


def _pad2d(a, rows, cols):
    return jnp.pad(a, ((0, rows - a.shape[0]), (0, cols - a.shape[1])))


def _choose_batch_tile(batch, block_batch):
    """Batch tile: as large as possible (amortize per-grid-step overhead),
    a multiple of 8 (f32 sublane), and an even grid length when possible so
    the parallel batch axis splits evenly across v7x's two TensorCores
    (no-op on single-core v5e/v6e)."""
    if batch <= SUBLANE:
        return batch                                   # full-dim block is legal
    tb = min((block_batch // SUBLANE) * SUBLANE, (batch // SUBLANE) * SUBLANE)
    tb = max(tb, SUBLANE)
    steps = pl.cdiv(batch, tb)
    if steps == 1 and batch >= 2 * SUBLANE:
        tb = max(SUBLANE, _round_up((batch + 1) // 2, SUBLANE))
    elif steps > 1 and steps % 2 == 1:
        tb = max(SUBLANE, _round_up(pl.cdiv(batch, steps + 1), SUBLANE))
    return tb


def _batch_spec(tb, feat):
    # Streams over the batch grid axis.
    return pl.BlockSpec((tb, feat), lambda i: (i, 0))


def _resident_spec(shape):
    # Full-array block; same block index every step -> stays VMEM-resident.
    return pl.BlockSpec(shape, lambda i: (0,) * len(shape))


def _compiler_params():
    return pltpu.CompilerParams(dimension_semantics=("parallel",))


# ----------------------------------------------------------------------------
# Parameter preparation: zero-pad feature dims to 128 lanes and lift the
# critic's "action" weight block to full input width so kernels never slice.
# Done once per call on tiny arrays (negligible); kernel bodies see only
# full-lane, full-sublane operands.
# ----------------------------------------------------------------------------
def _prep_actor(params, in_dim_full=None):
    w1, b1, w2, b2, w3, b3 = params
    state_dim, h1 = w1.shape
    h2, out = w2.shape[1], w3.shape[1]
    in_dim = state_dim if in_dim_full is None else in_dim_full
    h1p, h2p, outp = _round_up(h1, LANE), _round_up(h2, LANE), _round_up(out, LANE)

    w1p = jnp.zeros((in_dim, h1p), jnp.float32).at[:state_dim, :h1].set(w1)
    b1p = _pad2d(b1, 1, h1p)
    w2p = jnp.zeros((h1p, h2p), jnp.float32).at[:h1, :h2].set(w2)
    b2p = _pad2d(b2, 1, h2p)
    w3p = jnp.zeros((h2p, outp), jnp.float32).at[:h2, :out].set(w3)
    b3p = _pad2d(b3, 1, outp)
    return (w1p, b1p, w2p, b2p, w3p, b3p), out


def _prep_critic(params, action_size):
    w1, b1, w2, b2, w3, b3 = params
    state_dim, h1 = w1.shape
    in_dim = state_dim + action_size
    h2, out = w2.shape[1], w3.shape[1]
    h1p, h2p, outp = _round_up(h1, LANE), _round_up(h2, LANE), _round_up(out, LANE)

    # W1 lifted to full input width (zero rows for the action columns).
    w1f = jnp.zeros((in_dim, h1p), jnp.float32).at[:state_dim, :h1].set(w1)
    b1p = _pad2d(b1, 1, h1p)
    # cat([h1, actions]) @ W2 == h1 @ W2[:h1] + x @ W2a_full   (zeros elsewhere)
    w2s = jnp.zeros((h1p, h2p), jnp.float32).at[:h1, :h2].set(w2[:h1])
    w2a = jnp.zeros((in_dim, h2p), jnp.float32).at[state_dim:, :h2].set(w2[h1:])
    b2p = _pad2d(b2, 1, h2p)
    w3p = jnp.zeros((h2p, outp), jnp.float32).at[:h2, :out].set(w3)
    b3p = _pad2d(b3, 1, outp)
    return (w1f, b1p, w2s, w2a, b2p, w3p, b3p), out


# ----------------------------------------------------------------------------
# Kernel math (all operands full-lane / full-sublane; no in-kernel slicing).
# ----------------------------------------------------------------------------
def _actor_math(x, w1, b1, w2, b2, w3, b3):
    h1 = jnp.maximum(jnp.dot(x, w1, preferred_element_type=jnp.float32) + b1, 0.0)
    h2 = jnp.maximum(jnp.dot(h1, w2, preferred_element_type=jnp.float32) + b2, 0.0)
    return jnp.tanh(jnp.dot(h2, w3, preferred_element_type=jnp.float32) + b3)


def _critic_math(x, w1, b1, w2s, w2a, b2, w3, b3):
    h1 = jnp.maximum(jnp.dot(x, w1, preferred_element_type=jnp.float32) + b1, 0.0)
    pre2 = (jnp.dot(h1, w2s, preferred_element_type=jnp.float32)
            + jnp.dot(x, w2a, preferred_element_type=jnp.float32) + b2)
    h2 = jnp.maximum(pre2, 0.0)
    return jnp.dot(h2, w3, preferred_element_type=jnp.float32) + b3


def _actor_kernel(x_ref, w1_ref, b1_ref, w2_ref, b2_ref, w3_ref, b3_ref, o_ref):
    o_ref[...] = _actor_math(
        x_ref[...], w1_ref[...], b1_ref[...], w2_ref[...], b2_ref[...],
        w3_ref[...], b3_ref[...]).astype(o_ref.dtype)


def _critic_kernel(x_ref, w1_ref, b1_ref, w2s_ref, w2a_ref, b2_ref,
                   w3_ref, b3_ref, o_ref):
    o_ref[...] = _critic_math(
        x_ref[...], w1_ref[...], b1_ref[...], w2s_ref[...], w2a_ref[...],
        b2_ref[...], w3_ref[...], b3_ref[...]).astype(o_ref.dtype)


def _fused_kernel(x_ref,
                  aw1_ref, ab1_ref, aw2_ref, ab2_ref, aw3_ref, ab3_ref,
                  cw1_ref, cb1_ref, cw2s_ref, cw2a_ref, cb2_ref, cw3_ref, cb3_ref,
                  oa_ref, oc_ref):
    x = x_ref[...]
    oa_ref[...] = _actor_math(
        x, aw1_ref[...], ab1_ref[...], aw2_ref[...], ab2_ref[...],
        aw3_ref[...], ab3_ref[...]).astype(oa_ref.dtype)
    oc_ref[...] = _critic_math(
        x, cw1_ref[...], cb1_ref[...], cw2s_ref[...], cw2a_ref[...],
        cb2_ref[...], cw3_ref[...], cb3_ref[...]).astype(oc_ref.dtype)


# ----------------------------------------------------------------------------
# Wrappers.
# ----------------------------------------------------------------------------
@functools.partial(jax.jit, static_argnames=("block_batch",))
def actor_forward(x, params, block_batch=DEFAULT_BLOCK_BATCH):
    batch, in_dim = x.shape
    padded, out_dim = _prep_actor(params)
    w1p, b1p, w2p, b2p, w3p, b3p = padded
    h1p, h2p, outp = w1p.shape[1], w2p.shape[1], w3p.shape[1]
    tb = _choose_batch_tile(batch, block_batch)

    operands = (x, w1p, b1p, w2p, b2p, w3p, b3p)
    in_specs = [_batch_spec(tb, in_dim)] + [_resident_spec(p.shape)
                                            for p in operands[1:]]
    flops = 2 * batch * (in_dim * h1p + h1p * h2p + h2p * outp)
    bytes_accessed = 4 * (batch * (in_dim + outp)
                          + sum(int(p.size) for p in operands[1:]))
    out = pl.pallas_call(
        _actor_kernel,
        out_shape=jax.ShapeDtypeStruct((batch, outp), jnp.float32),
        grid=(pl.cdiv(batch, tb),),
        in_specs=in_specs,
        out_specs=_batch_spec(tb, outp),
        compiler_params=_compiler_params(),
        cost_estimate=pl.CostEstimate(flops=flops,
                                      transcendentals=batch * outp,
                                      bytes_accessed=bytes_accessed),
    )(*operands)
    return out[:, :out_dim]


@functools.partial(jax.jit, static_argnames=("action_size", "block_batch"))
def critic_forward(x, params, action_size, block_batch=DEFAULT_BLOCK_BATCH):
    batch, in_dim = x.shape
    padded, out_dim = _prep_critic(params, action_size)
    w1f, b1p, w2s, w2a, b2p, w3p, b3p = padded
    h1p, h2p, outp = w1f.shape[1], w2s.shape[1], w3p.shape[1]
    tb = _choose_batch_tile(batch, block_batch)

    operands = (x, w1f, b1p, w2s, w2a, b2p, w3p, b3p)
    in_specs = [_batch_spec(tb, in_dim)] + [_resident_spec(p.shape)
                                            for p in operands[1:]]
    flops = 2 * batch * (in_dim * h1p + h1p * h2p + in_dim * h2p + h2p * outp)
    bytes_accessed = 4 * (batch * (in_dim + outp)
                          + sum(int(p.size) for p in operands[1:]))
    out = pl.pallas_call(
        _critic_kernel,
        out_shape=jax.ShapeDtypeStruct((batch, outp), jnp.float32),
        grid=(pl.cdiv(batch, tb),),
        in_specs=in_specs,
        out_specs=_batch_spec(tb, outp),
        compiler_params=_compiler_params(),
        cost_estimate=pl.CostEstimate(flops=flops,
                                      transcendentals=0,
                                      bytes_accessed=bytes_accessed),
    )(*operands)
    return out[:, :out_dim]


@functools.partial(jax.jit, static_argnames=("action_size", "block_batch"))
def actor_critic_forward(x, actor_params, critic_params, action_size,
                         block_batch=DEFAULT_BLOCK_BATCH):
    """Fused MADDPG forward: x = [state, actions].  One pallas_call streams the
    single combined input; the actor reads only the state columns via its
    zero-padded W1 rows, the critic reads all of x."""
    batch, in_dim = x.shape
    a_padded, a_out = _prep_actor(actor_params, in_dim_full=in_dim)
    c_padded, c_out = _prep_critic(critic_params, action_size)
    aw1, ab1, aw2, ab2, aw3, ab3 = a_padded
    cw1, cb1, cw2s, cw2a, cb2, cw3, cb3 = c_padded
    a_outp = aw3.shape[1]
    c_outp = cw3.shape[1]
    tb = _choose_batch_tile(batch, block_batch)

    operands = (x, aw1, ab1, aw2, ab2, aw3, ab3,
                cw1, cb1, cw2s, cw2a, cb2, cw3, cb3)
    in_specs = [_batch_spec(tb, in_dim)] + [_resident_spec(p.shape)
                                            for p in operands[1:]]
    flops = 2 * batch * (in_dim * aw1.shape[1] + aw2.shape[0] * aw2.shape[1]
                         + aw3.shape[0] * a_outp
                         + in_dim * cw1.shape[1] + cw2s.shape[0] * cw2s.shape[1]
                         + in_dim * cw2a.shape[1] + cw3.shape[0] * c_outp)
    bytes_accessed = 4 * (batch * (in_dim + a_outp + c_outp)
                          + sum(int(p.size) for p in operands[1:]))
    oa, oc = pl.pallas_call(
        _fused_kernel,
        out_shape=(jax.ShapeDtypeStruct((batch, a_outp), jnp.float32),
                   jax.ShapeDtypeStruct((batch, c_outp), jnp.float32)),
        grid=(pl.cdiv(batch, tb),),
        in_specs=in_specs,
        out_specs=(_batch_spec(tb, a_outp), _batch_spec(tb, c_outp)),
        compiler_params=_compiler_params(),
        cost_estimate=pl.CostEstimate(flops=flops,
                                      transcendentals=batch * a_outp,
                                      bytes_accessed=bytes_accessed),
    )(*operands)
    return oa[:, :a_out], oc[:, :c_out]


# ----------------------------------------------------------------------------
# Deterministic parameter init, mirroring the PyTorch module's reset_parameters
# (fan_in quirk of the original hidden_init reproduced on purpose).
# Weights returned pre-transposed to [in, out]; biases as [1, out].
# ----------------------------------------------------------------------------
def init_network_params(key, input_dim, hidden_in, hidden_out, output_dim,
                        actions_size=0, actor=False):
    fc2_in = hidden_in if actor else hidden_in + actions_size
    keys = jax.random.split(key, 6)

    def uniform(k, shape, lim):
        return jax.random.uniform(k, shape, jnp.float32, -lim, lim)

    lim1 = 1.0 / jnp.sqrt(jnp.float32(hidden_in))
    lim2 = 1.0 / jnp.sqrt(jnp.float32(hidden_out))

    w1 = uniform(keys[0], (input_dim, hidden_in), lim1)
    b1 = uniform(keys[1], (1, hidden_in), 1.0 / jnp.sqrt(jnp.float32(input_dim)))
    w2 = uniform(keys[2], (fc2_in, hidden_out), lim2)
    b2 = uniform(keys[3], (1, hidden_out), 1.0 / jnp.sqrt(jnp.float32(fc2_in)))
    w3 = uniform(keys[4], (hidden_out, output_dim), 0.3)
    b3 = uniform(keys[5], (1, output_dim), 1.0 / jnp.sqrt(jnp.float32(hidden_out)))
    return (w1, b1, w2, b2, w3, b3)


# ----------------------------------------------------------------------------
# Pure-JAX references.
# ----------------------------------------------------------------------------
def actor_ref(x, params):
    w1, b1, w2, b2, w3, b3 = params
    h1 = jax.nn.relu(x @ w1 + b1)
    h2 = jax.nn.relu(h1 @ w2 + b2)
    return jnp.tanh(h2 @ w3 + b3)


def critic_ref(x, params, action_size):
    w1, b1, w2, b2, w3, b3 = params
    state = x[:, :-action_size]
    actions = x[:, -action_size:]
    h1 = jax.nn.relu(state @ w1 + b1)
    h1_cat = jnp.concatenate([h1, actions], axis=1)
    h2 = jax.nn.relu(h1_cat @ w2 + b2)
    return h2 @ w3 + b3


if __name__ == "__main__":
    key = jax.random.PRNGKey(0)
    k_x, k_actor, k_critic = jax.random.split(key, 3)

    batch = 16
    state_dim = 20
    action_size = 4
    hidden_in = 32
    hidden_out = 32

    # Critic input = [state, actions]; actor input = its state columns
    # (the usual MADDPG convention, enabling the fused single-input path).
    x_critic = jax.random.normal(k_x, (batch, state_dim + action_size), jnp.float32)
    x_actor = x_critic[:, :state_dim]

    actor_params = init_network_params(
        k_actor, state_dim, hidden_in, hidden_out, action_size, actor=True)
    critic_params = init_network_params(
        k_critic, state_dim, hidden_in, hidden_out, 1,
        actions_size=action_size, actor=False)

    # Fused single-launch path (one streamed input, two 128-lane output slabs).
    y_actor_f, y_critic_f = actor_critic_forward(
        x_critic, actor_params, critic_params, action_size)
    jax.block_until_ready((y_actor_f, y_critic_f))

    # Individual paths (same padded-operand kernels, separate launches).
    y_actor = actor_forward(x_actor, actor_params)
    y_critic = critic_forward(x_critic, critic_params, action_size)
    jax.block_until_ready((y_actor, y_critic))

    y_actor_r = actor_ref(x_actor, actor_params)
    y_critic_r = critic_ref(x_critic, critic_params, action_size)

    assert y_actor.shape == (batch, action_size)
    assert y_critic.shape == (batch, 1)
    assert jnp.allclose(y_actor, y_actor_r, atol=2e-4, rtol=2e-4)
    assert jnp.allclose(y_critic, y_critic_r, atol=2e-4, rtol=2e-4)
    assert jnp.allclose(y_actor_f, y_actor_r, atol=2e-4, rtol=2e-4)
    assert jnp.allclose(y_critic_f, y_critic_r, atol=2e-4, rtol=2e-4)

    print("KERNEL_OK")
</pallas_src>

<mosaic_0001>
module attributes {stable_mosaic.version = 11 : i64} {
  func.func @_fused_kernel(%arg0: i32, %arg1: memref<8x24xf32, #tpu.memory_space<vmem>>, %arg2: memref<24x128xf32, #tpu.memory_space<vmem>>, %arg3: memref<1x128xf32, #tpu.memory_space<vmem>>, %arg4: memref<128x128xf32, #tpu.memory_space<vmem>>, %arg5: memref<1x128xf32, #tpu.memory_space<vmem>>, %arg6: memref<128x128xf32, #tpu.memory_space<vmem>>, %arg7: memref<1x128xf32, #tpu.memory_space<vmem>>, %arg8: memref<24x128xf32, #tpu.memory_space<vmem>>, %arg9: memref<1x128xf32, #tpu.memory_space<vmem>>, %arg10: memref<128x128xf32, #tpu.memory_space<vmem>>, %arg11: memref<24x128xf32, #tpu.memory_space<vmem>>, %arg12: memref<1x128xf32, #tpu.memory_space<vmem>>, %arg13: memref<128x128xf32, #tpu.memory_space<vmem>>, %arg14: memref<1x128xf32, #tpu.memory_space<vmem>>, %arg15: memref<8x128xf32, #tpu.memory_space<vmem>>, %arg16: memref<8x128xf32, #tpu.memory_space<vmem>>) attributes {dimension_semantics = [#tpu.dimension_semantics<parallel>], iteration_bounds = array<i64: 2>, scalar_prefetch = 0 : i64, scratch_operands = 0 : i64, tpu.core_type = #tpu.core_type<tc>, window_params = [{transform_indices = @transform_0, window_bounds = array<i64: 8, 24>}, {pipeline_mode = #tpu.pipeline_mode<synchronous>, transform_indices = @transform_1, window_bounds = array<i64: 24, 128>}, {pipeline_mode = #tpu.pipeline_mode<synchronous>, transform_indices = @transform_2, window_bounds = array<i64: 1, 128>}, {pipeline_mode = #tpu.pipeline_mode<synchronous>, transform_indices = @transform_3, window_bounds = array<i64: 128, 128>}, {pipeline_mode = #tpu.pipeline_mode<synchronous>, transform_indices = @transform_4, window_bounds = array<i64: 1, 128>}, {pipeline_mode = #tpu.pipeline_mode<synchronous>, transform_indices = @transform_5, window_bounds = array<i64: 128, 128>}, {pipeline_mode = #tpu.pipeline_mode<synchronous>, transform_indices = @transform_6, window_bounds = array<i64: 1, 128>}, {pipeline_mode = #tpu.pipeline_mode<synchronous>, transform_indices = @transform_7, window_bounds = array<i64: 24, 128>}, {pipeline_mode = #tpu.pipeline_mode<synchronous>, transform_indices = @transform_8, window_bounds = array<i64: 1, 128>}, {pipeline_mode = #tpu.pipeline_mode<synchronous>, transform_indices = @transform_9, window_bounds = array<i64: 128, 128>}, {pipeline_mode = #tpu.pipeline_mode<synchronous>, transform_indices = @transform_10, window_bounds = array<i64: 24, 128>}, {pipeline_mode = #tpu.pipeline_mode<synchronous>, transform_indices = @transform_11, window_bounds = array<i64: 1, 128>}, {pipeline_mode = #tpu.pipeline_mode<synchronous>, transform_indices = @transform_12, window_bounds = array<i64: 128, 128>}, {pipeline_mode = #tpu.pipeline_mode<synchronous>, transform_indices = @transform_13, window_bounds = array<i64: 1, 128>}, {transform_indices = @transform_14, window_bounds = array<i64: 8, 128>}, {transform_indices = @transform_15, window_bounds = array<i64: 8, 128>}]} {
    %c0 = arith.constant 0 : index
    %c0_0 = arith.constant 0 : index
    %0 = vector.load %arg1[%c0, %c0_0] : memref<8x24xf32, #tpu.memory_space<vmem>>, vector<8x24xf32>
    %c0_1 = arith.constant 0 : index
    %c0_2 = arith.constant 0 : index
    %1 = vector.load %arg2[%c0_1, %c0_2] : memref<24x128xf32, #tpu.memory_space<vmem>>, vector<24x128xf32>
    %c0_3 = arith.constant 0 : index
    %c0_4 = arith.constant 0 : index
    %2 = vector.load %arg3[%c0_3, %c0_4] : memref<1x128xf32, #tpu.memory_space<vmem>>, vector<1x128xf32>
    %c0_5 = arith.constant 0 : index
    %c0_6 = arith.constant 0 : index
    %3 = vector.load %arg4[%c0_5, %c0_6] : memref<128x128xf32, #tpu.memory_space<vmem>>, vector<128x128xf32>
    %c0_7 = arith.constant 0 : index
    %c0_8 = arith.constant 0 : index
    %4 = vector.load %arg5[%c0_7, %c0_8] : memref<1x128xf32, #tpu.memory_space<vmem>>, vector<1x128xf32>
    %c0_9 = arith.constant 0 : index
    %c0_10 = arith.constant 0 : index
    %5 = vector.load %arg6[%c0_9, %c0_10] : memref<128x128xf32, #tpu.memory_space<vmem>>, vector<128x128xf32>
    %c0_11 = arith.constant 0 : index
    %c0_12 = arith.constant 0 : index
    %6 = vector.load %arg7[%c0_11, %c0_12] : memref<1x128xf32, #tpu.memory_space<vmem>>, vector<1x128xf32>
    %cst = arith.constant dense<0.000000e+00> : vector<8x128xf32>
    %7 = tpu.matmul %0, %1, %cst {dimension_numbers = #tpu.dot_dimension_numbers<[1], [0], [0], [1], [0, 0, 1, 1], [], []>} : vector<8x24xf32>, vector<24x128xf32>, vector<8x128xf32> -> vector<8x128xf32>
    %8 = vector.broadcast %2 : vector<1x128xf32> to vector<8x128xf32>
    %9 = arith.addf %7, %8 : vector<8x128xf32>
    %cst_13 = arith.constant 0.000000e+00 : f32
    %10 = vector.broadcast %cst_13 : f32 to vector<8x128xf32>
    %11 = arith.maximumf %9, %10 : vector<8x128xf32>
    %cst_14 = arith.constant dense<0.000000e+00> : vector<8x128xf32>
    %12 = tpu.matmul %11, %3, %cst_14 {dimension_numbers = #tpu.dot_dimension_numbers<[1], [0], [0], [1], [0, 0, 1, 1], [], []>} : vector<8x128xf32>, vector<128x128xf32>, vector<8x128xf32> -> vector<8x128xf32>
    %13 = vector.broadcast %4 : vector<1x128xf32> to vector<8x128xf32>
    %14 = arith.addf %12, %13 : vector<8x128xf32>
    %cst_15 = arith.constant 0.000000e+00 : f32
    %15 = vector.broadcast %cst_15 : f32 to vector<8x128xf32>
    %16 = arith.maximumf %14, %15 : vector<8x128xf32>
    %cst_16 = arith.constant dense<0.000000e+00> : vector<8x128xf32>
    %17 = tpu.matmul %16, %5, %cst_16 {dimension_numbers = #tpu.dot_dimension_numbers<[1], [0], [0], [1], [0, 0, 1, 1], [], []>} : vector<8x128xf32>, vector<128x128xf32>, vector<8x128xf32> -> vector<8x128xf32>
    %18 = vector.broadcast %6 : vector<1x128xf32> to vector<8x128xf32>
    %19 = arith.addf %17, %18 : vector<8x128xf32>
    %20 = math.tanh %19 : vector<8x128xf32>
    %c0_17 = arith.constant 0 : index
    %c0_18 = arith.constant 0 : index
    %21 = vector.load %arg15[%c0_17, %c0_18] : memref<8x128xf32, #tpu.memory_space<vmem>>, vector<8x128xf32>
    tpu.vector_store %arg15[%c0_17, %c0_18], %20 {strides = array<i32>} : memref<8x128xf32, #tpu.memory_space<vmem>>, vector<8x128xf32>,
    %c0_19 = arith.constant 0 : index
    %c0_20 = arith.constant 0 : index
    %22 = vector.load %arg8[%c0_19, %c0_20] : memref<24x128xf32, #tpu.memory_space<vmem>>, vector<24x128xf32>
    %c0_21 = arith.constant 0 : index
    %c0_22 = arith.constant 0 : index
    %23 = vector.load %arg9[%c0_21, %c0_22] : memref<1x128xf32, #tpu.memory_space<vmem>>, vector<1x128xf32>
    %c0_23 = arith.constant 0 : index
    %c0_24 = arith.constant 0 : index
    %24 = vector.load %arg10[%c0_23, %c0_24] : memref<128x128xf32, #tpu.memory_space<vmem>>, vector<128x128xf32>
    %c0_25 = arith.constant 0 : index
    %c0_26 = arith.constant 0 : index
    %25 = vector.load %arg11[%c0_25, %c0_26] : memref<24x128xf32, #tpu.memory_space<vmem>>, vector<24x128xf32>
    %c0_27 = arith.constant 0 : index
    %c0_28 = arith.constant 0 : index
    %26 = vector.load %arg12[%c0_27, %c0_28] : memref<1x128xf32, #tpu.memory_space<vmem>>, vector<1x128xf32>
    %c0_29 = arith.constant 0 : index
    %c0_30 = arith.constant 0 : index
    %27 = vector.load %arg13[%c0_29, %c0_30] : memref<128x128xf32, #tpu.memory_space<vmem>>, vector<128x128xf32>
    %c0_31 = arith.constant 0 : index
    %c0_32 = arith.constant 0 : index
    %28 = vector.load %arg14[%c0_31, %c0_32] : memref<1x128xf32, #tpu.memory_space<vmem>>, vector<1x128xf32>
    %cst_33 = arith.constant dense<0.000000e+00> : vector<8x128xf32>
    %29 = tpu.matmul %0, %22, %cst_33 {dimension_numbers = #tpu.dot_dimension_numbers<[1], [0], [0], [1], [0, 0, 1, 1], [], []>} : vector<8x24xf32>, vector<24x128xf32>, vector<8x128xf32> -> vector<8x128xf32>
    %30 = vector.broadcast %23 : vector<1x128xf32> to vector<8x128xf32>
    %31 = arith.addf %29, %30 : vector<8x128xf32>
    %cst_34 = arith.constant 0.000000e+00 : f32
    %32 = vector.broadcast %cst_34 : f32 to vector<8x128xf32>
    %33 = arith.maximumf %31, %32 : vector<8x128xf32>
    %cst_35 = arith.constant dense<0.000000e+00> : vector<8x128xf32>
    %34 = tpu.matmul %33, %24, %cst_35 {dimension_numbers = #tpu.dot_dimension_numbers<[1], [0], [0], [1], [0, 0, 1, 1], [], []>} : vector<8x128xf32>, vector<128x128xf32>, vector<8x128xf32> -> vector<8x128xf32>
    %cst_36 = arith.constant dense<0.000000e+00> : vector<8x128xf32>
    %35 = tpu.matmul %0, %25, %cst_36 {dimension_numbers = #tpu.dot_dimension_numbers<[1], [0], [0], [1], [0, 0, 1, 1], [], []>} : vector<8x24xf32>, vector<24x128xf32>, vector<8x128xf32> -> vector<8x128xf32>
    %36 = arith.addf %34, %35 : vector<8x128xf32>
    %37 = vector.broadcast %26 : vector<1x128xf32> to vector<8x128xf32>
    %38 = arith.addf %36, %37 : vector<8x128xf32>
    %cst_37 = arith.constant 0.000000e+00 : f32
    %39 = vector.broadcast %cst_37 : f32 to vector<8x128xf32>
    %40 = arith.maximumf %38, %39 : vector<8x128xf32>
    %cst_38 = arith.constant dense<0.000000e+00> : vector<8x128xf32>
    %41 = tpu.matmul %40, %27, %cst_38 {dimension_numbers = #tpu.dot_dimension_numbers<[1], [0], [0], [1], [0, 0, 1, 1], [], []>} : vector<8x128xf32>, vector<128x128xf32>, vector<8x128xf32> -> vector<8x128xf32>
    %42 = vector.broadcast %28 : vector<1x128xf32> to vector<8x128xf32>
    %43 = arith.addf %41, %42 : vector<8x128xf32>
    %c0_39 = arith.constant 0 : index
    %c0_40 = arith.constant 0 : index
    %44 = vector.load %arg16[%c0_39, %c0_40] : memref<8x128xf32, #tpu.memory_space<vmem>>, vector<8x128xf32>
    tpu.vector_store %arg16[%c0_39, %c0_40], %43 {strides = array<i32>} : memref<8x128xf32, #tpu.memory_space<vmem>>, vector<8x128xf32>,
    return
  }
  func.func @transform_0(%arg0: i32) -> (i32, i32) {
    %c0_i32 = arith.constant 0 : i32
    %c0_i32_0 = arith.constant 0 : i32
    return %arg0, %c0_i32 : i32, i32
  }
  func.func @transform_1(%arg0: i32) -> (i32, i32) {
    %c0_i32 = arith.constant 0 : i32
    %c0_i32_0 = arith.constant 0 : i32
    %c0_i32_1 = arith.constant 0 : i32
    return %c0_i32, %c0_i32_0 : i32, i32
  }
  func.func @transform_2(%arg0: i32) -> (i32, i32) {
    %c0_i32 = arith.constant 0 : i32
    %c0_i32_0 = arith.constant 0 : i32
    %c0_i32_1 = arith.constant 0 : i32
    return %c0_i32, %c0_i32_0 : i32, i32
  }
  func.func @transform_3(%arg0: i32) -> (i32, i32) {
    %c0_i32 = arith.constant 0 : i32
    %c0_i32_0 = arith.constant 0 : i32
    %c0_i32_1 = arith.constant 0 : i32
    return %c0_i32, %c0_i32_0 : i32, i32
  }
  func.func @transform_4(%arg0: i32) -> (i32, i32) {
    %c0_i32 = arith.constant 0 : i32
    %c0_i32_0 = arith.constant 0 : i32
    %c0_i32_1 = arith.constant 0 : i32
    return %c0_i32, %c0_i32_0 : i32, i32
  }
  func.func @transform_5(%arg0: i32) -> (i32, i32) {
    %c0_i32 = arith.constant 0 : i32
    %c0_i32_0 = arith.constant 0 : i32
    %c0_i32_1 = arith.constant 0 : i32
    return %c0_i32, %c0_i32_0 : i32, i32
  }
  func.func @transform_6(%arg0: i32) -> (i32, i32) {
    %c0_i32 = arith.constant 0 : i32
    %c0_i32_0 = arith.constant 0 : i32
    %c0_i32_1 = arith.constant 0 : i32
    return %c0_i32, %c0_i32_0 : i32, i32
  }
  func.func @transform_7(%arg0: i32) -> (i32, i32) {
    %c0_i32 = arith.constant 0 : i32
    %c0_i32_0 = arith.constant 0 : i32
    %c0_i32_1 = arith.constant 0 : i32
    return %c0_i32, %c0_i32_0 : i32, i32
  }
  func.func @transform_8(%arg0: i32) -> (i32, i32) {
    %c0_i32 = arith.constant 0 : i32
    %c0_i32_0 = arith.constant 0 : i32
    %c0_i32_1 = arith.constant 0 : i32
    return %c0_i32, %c0_i32_0 : i32, i32
  }
  func.func @transform_9(%arg0: i32) -> (i32, i32) {
    %c0_i32 = arith.constant 0 : i32
    %c0_i32_0 = arith.constant 0 : i32
    %c0_i32_1 = arith.constant 0 : i32
    return %c0_i32, %c0_i32_0 : i32, i32
  }
  func.func @transform_10(%arg0: i32) -> (i32, i32) {
    %c0_i32 = arith.constant 0 : i32
    %c0_i32_0 = arith.constant 0 : i32
    %c0_i32_1 = arith.constant 0 : i32
    return %c0_i32, %c0_i32_0 : i32, i32
  }
  func.func @transform_11(%arg0: i32) -> (i32, i32) {
    %c0_i32 = arith.constant 0 : i32
    %c0_i32_0 = arith.constant 0 : i32
    %c0_i32_1 = arith.constant 0 : i32
    return %c0_i32, %c0_i32_0 : i32, i32
  }
  func.func @transform_12(%arg0: i32) -> (i32, i32) {
    %c0_i32 = arith.constant 0 : i32
    %c0_i32_0 = arith.constant 0 : i32
    %c0_i32_1 = arith.constant 0 : i32
    return %c0_i32, %c0_i32_0 : i32, i32
  }
  func.func @transform_13(%arg0: i32) -> (i32, i32) {
    %c0_i32 = arith.constant 0 : i32
    %c0_i32_0 = arith.constant 0 : i32
    %c0_i32_1 = arith.constant 0 : i32
    return %c0_i32, %c0_i32_0 : i32, i32
  }
  func.func @transform_14(%arg0: i32) -> (i32, i32) {
    %c0_i32 = arith.constant 0 : i32
    %c0_i32_0 = arith.constant 0 : i32
    return %arg0, %c0_i32 : i32, i32
  }
  func.func @transform_15(%arg0: i32) -> (i32, i32) {
    %c0_i32 = arith.constant 0 : i32
    %c0_i32_0 = arith.constant 0 : i32
    return %arg0, %c0_i32 : i32, i32
  }
}

</mosaic_0001>

<bundles_post_ra>
// kernel: actor_critic_forward.1
= control target key start
LH: loop header
LB: loop body
LE: loop exit
PB: predicated region body
PF: predicated region fallthrough
CT: control target
= control target key end

     0   :  { %s1678_s18 = smov 0   ;;  %s2000_s0 = inlined_call_operand.vmem [shape: f32[16,24], index: 0, kind: input, shape index: {}]   ;;  %s2001_s1 = inlined_call_operand.vmem [shape: f32[24,128], index: 1, kind: input, shape index: {}]   ;;  %s2002_s2 = inlined_call_operand.vmem [shape: f32[1,128], index: 2, kind: input, shape index: {}]   ;;  %s2003_s3 = inlined_call_operand.vmem [shape: f32[128,128], index: 3, kind: input, shape index: {}]   ;;  %s2004_s4 = inlined_call_operand.vmem [shape: f32[1,128], index: 4, kind: input, shape index: {}]   ;;  %s2005_s5 = inlined_call_operand.vmem [shape: f32[128,128], index: 5, kind: input, shape index: {}]   ;;  %s2006_s6 = inlined_call_operand.vmem [shape: f32[1,128], index: 6, kind: input, shape index: {}]   ;;  %s2007_s7 = inlined_call_operand.vmem [shape: f32[24,128], index: 7, kind: input, shape index: {}]   ;;  %s2008_s8 = inlined_call_operand.vmem [shape: f32[1,128], index: 8, kind: input, shape index: {}]   ;;  %s2009_s9 = inlined_call_operand.vmem [shape: f32[128,128], index: 9, kind: input, shape index: {}]   ;;  %s2010_s10 = inlined_call_operand.vmem [shape: f32[24,128], index: 10, kind: input, shape index: {}]   ;;  %s2011_s11 = inlined_call_operand.vmem [shape: f32[1,128], index: 11, kind: input, shape index: {}]   ;;  %s2012_s12 = inlined_call_operand.vmem [shape: f32[128,128], index: 12, kind: input, shape index: {}]   ;;  %s2013_s13 = inlined_call_operand.vmem [shape: f32[1,128], index: 13, kind: input, shape index: {}]   ;;  %s2014_s14 = inlined_call_operand.vmem [shape: f32[16,128], index: 14, kind: output, shape index: {0}]   ;;  %s2015_s15 = inlined_call_operand.vmem [shape: f32[16,128], index: 15, kind: output, shape index: {1}]  }
   0x1 LB: > { %s1203_s19 = sadd.s32 4294967295, %s1593_s18   ;;  %p1207_p0 = scmp.ge.s32.totalorder %s1593_s18, 1  ;;  %s1593_s18 = sphi %s1678_s18, %s26_s18  }
   0x2   : > { %p439_p1 = scmp.lt.s32.totalorder %s1593_s18, 3 }
   0x4   : > { %p440_p2 = pnand %p1207_p0, %p439_p1 }
   0x5   : > { %v502_v0 = vld [vmem:[%s2001_s1] sm:$0xff] (!%p440_p2)  ;;  %v503_v1 = vld [vmem:[%s2001_s1 + $0x8] sm:$0xff] (!%p440_p2)  ;;  %v1595_v2 = vmov (!%p440_p2), 0.0|0.0   ;;  %vm1596_vm0 = vmmov (!%p440_p2), 0   ;;  %v1597_v4 = vmov (!%p440_p2), 0.0   ;;  %p489_p3 = scmp.lt.s32.totalorder (!%p440_p2), %s1203_s19, 1 }
   0x6   : > { %443 = sbr.rel (%p440_p2) target bundleno = 888 (0x378), region = 76  ;;  %1469 = vmatprep.subr.bf16.mxu0 (!%p440_p2), %v1595_v2  ;;  %v1470_v3 = vpack.c.bf16 (!%p440_p2), %v503_v1, %v502_v0  ;;  %1308 = vmatprep.mubr.msk.f32.mxu0 (!%p440_p2), %vm1596_vm0, %v1597_v4  ;;  %v506_v5 = vld [vmem:[%s2003_s3] sm:$0xff] (!%p440_p2)  ;;  %v507_v6 = vld [vmem:[%s2003_s3 + $0x8] sm:$0xff] (!%p440_p2)  ;;  %v508_v7 = vld [vmem:[%s2003_s3 + $0x10] sm:$0xff] (!%p440_p2)  ;;  %vm546_vm1 = vcmask (!%p440_p2), 195584  }
   0x7   : > { %1472 = vmatprep.subr.bf16.mxu1 (!%p440_p2), %v1595_v2  ;;  %v1473_v8 = vpack.c.bf16 (!%p440_p2), %v507_v6, %v506_v5  ;;  %v509_v9 = vld [vmem:[%s2003_s3 + $0x18] sm:$0xff] (!%p440_p2)  ;;  %1343 = vmatprep.mubr.msk.f32.mxu1 (!%p440_p2), %vm1596_vm0, %v1597_v4  ;;  %v504_v10 = vld [vmem:[%s2001_s1 + $0x10] sm:$0xff] (!%p440_p2)  ;;  %v510_v12 = vld [vmem:[%s2003_s3 + $0x20] sm:$0xff] (!%p440_p2) }
   0x8   : > { %1471 = vmatpush3.bf16.msra.mxu0 (!%p440_p2), %v1470_v3  ;;  %v1476_v11 = vpack.c.bf16 (!%p440_p2), %v509_v9, %v508_v7  ;;  %v511_v13 = vld [vmem:[%s2003_s3 + $0x28] sm:$0xff] (!%p440_p2)  ;;  %v512_v16 = vld [vmem:[%s2003_s3 + $0x30] sm:$0xff] (!%p440_p2)  ;;  %v513_v17 = vld [vmem:[%s2003_s3 + $0x38] sm:$0xff] (!%p440_p2) }
   0x9   : > { %1306 = vmatprep.subr.mxu0 (!%p440_p2), %v1597_v4  ;;  %1474 = vmatpush3.bf16.msra.mxu1 (!%p440_p2), %v1473_v8  ;;  %v1479_v15 = vpack.c.bf16 (!%p440_p2), %v511_v13, %v510_v12  ;;  %v1482_v18 = vpack.c.bf16 (!%p440_p2), %v513_v17, %v512_v16  ;;  %v514_v19 = vld [vmem:[%s2003_s3 + $0x40] sm:$0xff] (!%p440_p2)  ;;  %v515_v20 = vld [vmem:[%s2003_s3 + $0x48] sm:$0xff] (!%p440_p2)  ;;  %v516_v22 = vld [vmem:[%s2003_s3 + $0x50] sm:$0xff] (!%p440_p2) }
   0xa   : > { %1475 = vmatprep.subr.bf16.mxu1 (!%p440_p2), %v1595_v2  ;;  %v1485_v21 = vpack.c.bf16 (!%p440_p2), %v515_v20, %v514_v19  ;;  %v517_v23 = vld [vmem:[%s2003_s3 + $0x58] sm:$0xff] (!%p440_p2)  ;;  %v518_v25 = vld [vmem:[%s2003_s3 + $0x60] sm:$0xff] (!%p440_p2)  ;;  %v519_v26 = vld [vmem:[%s2003_s3 + $0x68] sm:$0xff] (!%p440_p2) }
   0xb   : > { %v1488_v24 = vpack.c.bf16 (!%p440_p2), %v517_v23, %v516_v22  ;;  %v1491_v27 = vpack.c.bf16 (!%p440_p2), %v519_v26, %v518_v25  ;;  %v520_v28 = vld [vmem:[%s2003_s3 + $0x70] sm:$0xff] (!%p440_p2)  ;;  %v521_v29 = vld [vmem:[%s2003_s3 + $0x78] sm:$0xff] (!%p440_p2)  ;;  %v523_v31 = vld [vmem:[%s2005_s5] sm:$0xff] (!%p440_p2) }
   0xc   : > { %1307 = vmatpush3.msra.mxu0 (!%p440_p2), %v504_v10  ;;  %v1494_v30 = vpack.c.bf16 (!%p440_p2), %v521_v29, %v520_v28  ;;  %v524_v32 = vld [vmem:[%s2005_s5 + $0x8] sm:$0xff] (!%p440_p2)  ;;  %v525_v33 = vld [vmem:[%s2005_s5 + $0x10] sm:$0xff] (!%p440_p2)  ;;  %v526_v35 = vld [vmem:[%s2005_s5 + $0x18] sm:$0xff] (!%p440_p2) }
   0xd   : > { %s2017_s19 = smov (!%p489_p3, %s1203_s19), 1  ;;  %1477 = vmatpush3.bf16.msra.mxu1 %v1476_v11  ;;  %1496 = vmatprep.subr.bf16.mxu0 %v1595_v2  ;;  %v1497_v34 = vpack.c.bf16 %v524_v32, %v523_v31  ;;  %v1500_v36 = vpack.c.bf16 %v526_v35, %v525_v33  ;;  %v527_v37 = vld [vmem:[%s2005_s5 + $0x20] sm:$0xff]  ;;  %v528_v38 = vld [vmem:[%s2005_s5 + $0x28] sm:$0xff]  ;;  %v529_v40 = vld [vmem:[%s2005_s5 + $0x30] sm:$0xff] }
   0xe   : > { %s1714_s21 = sshll.u32 %s2017_s19, 3  ;;  %1478 = vmatprep.subr.bf16.mxu1 %v1595_v2  ;;  %v1503_v39 = vpack.c.bf16 %v528_v38, %v527_v37  ;;  %v530_v41 = vld [vmem:[%s2005_s5 + $0x38] sm:$0xff]  ;;  %v531_v43 = vld [vmem:[%s2005_s5 + $0x40] sm:$0xff]  ;;  %v532_v44 = vld [vmem:[%s2005_s5 + $0x48] sm:$0xff] }
   0xf   : > { %s492_s28 = scalar_lea.vmem %s2000_s0, %s1714_s21  ;;  %v1506_v42 = vpack.c.bf16 %v530_v41, %v529_v40  ;;  %v1509_v45 = vpack.c.bf16 %v532_v44, %v531_v43  ;;  %v533_v46 = vld [vmem:[%s2005_s5 + $0x50] sm:$0xff]  ;;  %v534_v47 = vld [vmem:[%s2005_s5 + $0x58] sm:$0xff]  ;;  %v535_v49 = vld [vmem:[%s2005_s5 + $0x60] sm:$0xff]  ;;  %s496_s26 = scalar_lea.vmem %s2014_s14, %s1714_s21 }
  0x10   : > { %v1727_v14 = vld [vmem:[%s492_s28] sm:$0xff]  ;;  %v1512_v48 = vpack.c.bf16 %v534_v47, %v533_v46  ;;  %v536_v50 = vld [vmem:[%s2005_s5 + $0x68] sm:$0xff]  ;;  %v778_v62 = vld [vmem:[%s2007_s7 + $0x10] sm:$0xff]  ;;  %s500_s30 = scalar_lea.vmem %s2015_s15, %s1714_s21 }
  0x11   : > { %1309 = vmatmul.mubr.msk.f32.vlgmr.msra.gmra.mrb[0].mxu0 %vm546_vm1, %v1727_v14  ;;  %1480 = vmatpush3.bf16.msra.mxu1 %v1479_v15  ;;  %v1515_v51 = vpack.c.bf16 %v536_v50, %v535_v49  ;;  %v1211_v52 = vld [vmem:[%s2002_s2] ss:$0 sm:$0xff]  ;;  %v777_v54 = vld [vmem:[%s2007_s7 + $0x8] sm:$0xff]  ;;  %v782_v0 = vld [vmem:[%s2009_s9 + $0x10] sm:$0xff] }
  0x12   : > { %1378 = vmatprep.mubr.msk.f32.mxu0 %vm1596_vm0, %v1597_v4  ;;  %1481 = vmatprep.subr.bf16.mxu1 %v1595_v2  ;;  %v776_v53 = vld [vmem:[%s2007_s7] sm:$0xff]  ;;  %v781_v61 = vld [vmem:[%s2009_s9 + $0x8] sm:$0xff]  ;;  %v783_v1 = vld [vmem:[%s2009_s9 + $0x18] sm:$0xff] }
  0x13   : > { %1498 = vmatpush3.bf16.msra.mxu0 %v1497_v34  ;;  %v1521_v58 = vpack.c.bf16 %v777_v54, %v776_v53  ;;  %v780_v60 = vld [vmem:[%s2009_s9] sm:$0xff]  ;;  %v1530_v3 = vpack.c.bf16 %v783_v1, %v782_v0  ;;  %v785_v6 = vld [vmem:[%s2009_s9 + $0x28] sm:$0xff]  ;;  %v786_v8 = vld [vmem:[%s2009_s9 + $0x30] sm:$0xff] }
  0x14   : > { %1499 = vmatprep.subr.bf16.mxu0 %v1595_v2  ;;  %v1527_v63 = vpack.c.bf16 %v781_v61, %v780_v60  ;;  %v784_v5 = vld [vmem:[%s2009_s9 + $0x20] sm:$0xff]  ;;  %v787_v9 = vld [vmem:[%s2009_s9 + $0x38] sm:$0xff]  ;;  %v789_v12 = vld [vmem:[%s2009_s9 + $0x48] sm:$0xff] }
  0x15   : > { %1483 = vmatpush3.bf16.msra.mxu1 %v1482_v18  ;;  %v1533_v7 = vpack.c.bf16 %v785_v6, %v784_v5  ;;  %v1536_v10 = vpack.c.bf16 %v787_v9, %v786_v8  ;;  %v788_v11 = vld [vmem:[%s2009_s9 + $0x40] sm:$0xff]  ;;  %v790_v15 = vld [vmem:[%s2009_s9 + $0x50] sm:$0xff]  ;;  %v791_v16 = vld [vmem:[%s2009_s9 + $0x58] sm:$0xff] }
  0x16   : > { %1484 = vmatprep.subr.bf16.mxu1 %v1595_v2  ;;  %v1539_v13 = vpack.c.bf16 %v789_v12, %v788_v11  ;;  %v1542_v17 = vpack.c.bf16 %v791_v16, %v790_v15  ;;  %v537_v18 = vld [vmem:[%s2005_s5 + $0x70] sm:$0xff]  ;;  %v538_v19 = vld [vmem:[%s2005_s5 + $0x78] sm:$0xff]  ;;  %v793_v22 = vld [vmem:[%s2009_s9 + $0x68] sm:$0xff] }
  0x17   : > { %1501 = vmatpush3.bf16.msra.mxu0 %v1500_v36  ;;  %v1518_v20 = vpack.c.bf16 %v538_v19, %v537_v18  ;;  %v795_v25 = vld [vmem:[%s2009_s9 + $0x78] sm:$0xff]  ;;  %v796_v28 = vld [vmem:[%s2010_s10] sm:$0xff]  ;;  %v797_v29 = vld [vmem:[%s2010_s10 + $0x8] sm:$0xff] }
  0x18   : > { %1502 = vmatprep.subr.bf16.mxu0 %v1595_v2  ;;  %v1524_v33 = vpack.c.bf16 %v797_v29, %v796_v28  ;;  %v1215_v35 = vld [vmem:[%s2008_s8] ss:$0 sm:$0xff]  ;;  %v801_v38 = vld [vmem:[%s2012_s12 + $0x8] sm:$0xff]  ;;  %v798_v41 = vld [vmem:[%s2010_s10 + $0x10] sm:$0xff] }
  0x19   : > { %1486 = vmatpush3.bf16.msra.mxu1 %v1485_v21  ;;  %v792_v21 = vld [vmem:[%s2009_s9 + $0x60] sm:$0xff]  ;;  %v802_v44 = vld [vmem:[%s2012_s12 + $0x10] sm:$0xff]  ;;  %v807_v49 = vld [vmem:[%s2012_s12 + $0x38] sm:$0xff] }
  0x1a   : > { %1487 = vmatprep.subr.bf16.mxu1 %v1595_v2  ;;  %v1545_v23 = vpack.c.bf16 %v793_v22, %v792_v21  ;;  %v800_v37 = vld [vmem:[%s2012_s12] sm:$0xff]  ;;  %v810_v54 = vld [vmem:[%s2012_s12 + $0x50] sm:$0xff]  ;;  %v815_v61 = vld [vmem:[%s2012_s12 + $0x78] sm:$0xff] }
  0x1b   : > { %1504 = vmatpush3.bf16.msra.mxu0 %v1503_v39  ;;  %v1551_v43 = vpack.c.bf16 %v801_v38, %v800_v37  ;;  %v804_v47 = vld [vmem:[%s2012_s12 + $0x20] sm:$0xff]  ;;  %v814_v60 = vld [vmem:[%s2012_s12 + $0x70] sm:$0xff] }
  0x1c   : > { %1505 = vmatprep.subr.bf16.mxu0 %v1595_v2  ;;  %v1218_v5 = vld [vmem:[%s2011_s11] ss:$0 sm:$0xff] }
  0x1d   : > { %1489 = vmatpush3.bf16.msra.mxu1 %v1488_v24  ;;  %v794_v24 = vld [vmem:[%s2009_s9 + $0x70] sm:$0xff] }
  0x1e   : > { %1490 = vmatprep.subr.bf16.mxu1 %v1595_v2  ;;  %v1548_v26 = vpack.c.bf16 %v795_v25, %v794_v24 }
  0x1f   : > { %1507 = vmatpush3.bf16.msra.mxu0 %v1506_v42 }
  0x20   : > { %1508 = vmatprep.subr.bf16.mxu0 %v1595_v2 }
  0x21   : > { %1492 = vmatpush3.bf16.msra.mxu1 %v1491_v27  ;;  %v1213_v27 = vld [vmem:[%s2004_s4] ss:$0 sm:$0xff] }
  0x22   : > { %1493 = vmatprep.subr.bf16.mxu1 %v1595_v2 }
  0x23   : > { %1510 = vmatpush3.bf16.msra.mxu0 %v1509_v45  ;;  %v803_v45 = vld [vmem:[%s2012_s12 + $0x18] sm:$0xff] }
  0x24   : > { %1511 = vmatprep.subr.bf16.mxu0 %v1595_v2  ;;  %v1554_v46 = vpack.c.bf16 %v803_v45, %v802_v44 }
  0x25   : > { %1495 = vmatpush3.bf16.msra.mxu1 %v1494_v30 }
  0x26   : > { %1520 = vmatprep.subr.bf16.mxu1 %v1595_v2 }
  0x27   : > { %1513 = vmatpush3.bf16.msra.mxu0 %v1512_v48  ;;  %v805_v48 = vld [vmem:[%s2012_s12 + $0x28] sm:$0xff] }
  0x28   : > { %1514 = vmatprep.subr.bf16.mxu0 %v1595_v2 }
  0x2b   : > { %1516 = vmatpush3.bf16.msra.mxu0 %v1515_v51  ;;  %v808_v51 = vld [vmem:[%s2012_s12 + $0x40] sm:$0xff] }
  0x2c   : > { %1517 = vmatprep.subr.bf16.mxu0 %v1595_v2 }
  0x2f   : > { %1519 = vmatpush3.bf16.msra.mxu0 %v1518_v20 }
  0x30   : > { %1523 = vmatprep.subr.bf16.mxu0 %v1595_v2 }
  0xe4   : > { %v616_v55 = vpop.f32.mrb[0].mxu0 }
  0xe5   : > { %v617_v56 = vadd.f32 %v1211_v52, %v616_v55  ;;  %v1310_v57 = vpop.f32.mrb[1].mxu0  ;;  %v809_v52 = vld [vmem:[%s2012_s12 + $0x48] sm:$0xff]  ;;  %v811_v55 = vld [vmem:[%s2012_s12 + $0x58] sm:$0xff] }
  0xe6   : > { %v1563_v53 = vpack.c.bf16 %v809_v52, %v808_v51  ;;  %v812_v57 = vld [vmem:[%s2012_s12 + $0x60] sm:$0xff] }
  0xe7   : > { %v620_v59 = vmax.f32 %v617_v56, 0.0  ;;  %v1566_v56 = vpack.c.bf16 %v811_v55, %v810_v54 }
  0xe9   : > { %1344 = vmatmul.mubr.f32.vlgmr.msra.gmra.mrb[0].mxu1 %v620_v59 }
  0xea   : > { %1522 = vmatpush3.bf16.msra.mxu1 %v1521_v58  ;;  %1387 = vmatprep.mubr.msk.f32.mxu1 %vm1596_vm0, %v1597_v4  ;;  %v813_v58 = vld [vmem:[%s2012_s12 + $0x68] sm:$0xff] }
  0xeb   : > { %1385 = vmatprep.subr.mxu1 %v1597_v4  ;;  %v1569_v59 = vpack.c.bf16 %v813_v58, %v812_v57 }
  0xee   : > { %1386 = vmatpush3.msra.mxu1 %v778_v62  ;;  %v1572_v62 = vpack.c.bf16 %v815_v61, %v814_v60 }
  0xef   : > { %1388 = vmatmul.mubr.msk.f32.vlgmr.msra.gmra.mrb[2].mxu1 %vm546_vm1, %v1727_v14  ;;  %1526 = vmatprep.subr.bf16.mxu1 %v1595_v2 }
  0xf0   : > { %1528 = vmatpush3.bf16.msra.mxu1 %v1527_v63  ;;  %1431 = vmatprep.mubr.msk.f32.mxu1 %vm1596_vm0, %v1597_v4  ;;  %v1214_v63 = vld [vmem:[%s2006_s6] ss:$0 sm:$0xff] }
  0xf1   : > { %1529 = vmatprep.subr.bf16.mxu1 %v1595_v2 }
  0xf4   : > { %1531 = vmatpush3.bf16.msra.mxu1 %v1530_v3 }
  0xf5   : > { %1532 = vmatprep.subr.bf16.mxu1 %v1595_v2 }
  0xf8   : > { %1534 = vmatpush3.bf16.msra.mxu1 %v1533_v7 }
  0xf9   : > { %1535 = vmatprep.subr.bf16.mxu1 %v1595_v2 }
  0xfc   : > { %1537 = vmatpush3.bf16.msra.mxu1 %v1536_v10 }
  0xfd   : > { %1538 = vmatprep.subr.bf16.mxu1 %v1595_v2 }
 0x100   : > { %1540 = vmatpush3.bf16.msra.mxu1 %v1539_v13  ;;  %v1219_v13 = vld [vmem:[%s2013_s13] ss:$0 sm:$0xff] }
 0x101   : > { %1541 = vmatprep.subr.bf16.mxu1 %v1595_v2 }
 0x104   : > { %1543 = vmatpush3.bf16.msra.mxu1 %v1542_v17 }
 0x105   : > { %1544 = vmatprep.subr.bf16.mxu1 %v1595_v2 }
 0x108   : > { %1546 = vmatpush3.bf16.msra.mxu1 %v1545_v23 }
 0x109   : > { %1547 = vmatprep.subr.bf16.mxu1 %v1595_v2 }
 0x10c   : > { %1549 = vmatpush3.bf16.msra.mxu1 %v1548_v26 }
 0x1bc   : > { %v693_v30 = vpop.f32.mrb[0].mxu1 }
 0x1bd   : > { %v694_v31 = vadd.f32 %v1213_v27, %v693_v30  ;;  %v1345_v32 = vpop.f32.mrb[1].mxu1 }
 0x1bf   : > { %v697_v34 = vmax.f32 %v694_v31, 0.0 }
 0x1c1   : > { %1379 = vmatmul.mubr.f32.vlgmr.msra.gmra.mrb[2].mxu0 %v697_v34 }
 0x1c2   : > { %v889_v36 = vpop.f32.mrb[2].mxu1  ;;  %1525 = vmatpush3.bf16.msra.mxu0 %v1524_v33  ;;  %1396 = vmatprep.mubr.msk.f32.mxu0 %vm1596_vm0, %v1597_v4 }
 0x1c3   : > { %v890_v39 = vadd.f32 %v1215_v35, %v889_v36  ;;  %v1389_v40 = vpop.f32.mrb[3].mxu1  ;;  %1394 = vmatprep.subr.mxu0 %v1597_v4 }
 0x1c5   : > { %v893_v42 = vmax.f32 %v890_v39, 0.0 }
 0x1c6   : > { %1395 = vmatpush3.msra.mxu0 %v798_v41 }
 0x1c7   : > { %1397 = vmatmul.mubr.msk.f32.vlgmr.msra.gmra.mrb[4].mxu0 %vm546_vm1, %v1727_v14  ;;  %1432 = vmatmul.mubr.f32.vlgmr.msra.gmra.mrb[4].mxu1 %v893_v42  ;;  %v1557_v14 = vpack.c.bf16 %v805_v48, %v804_v47 }
 0x1c8   : > { %1550 = vmatprep.subr.bf16.mxu0 %v1595_v2  ;;  %1466 = vmatprep.mubr.msk.f32.mxu0 %vm1596_vm0, %v1597_v4  ;;  %v806_v4 = vld [vmem:[%s2012_s12 + $0x30] sm:$0xff] }
 0x1c9   : > { %1552 = vmatpush3.bf16.msra.mxu0 %v1551_v43  ;;  %v1560_v50 = vpack.c.bf16 %v807_v49, %v806_v4 }
 0x1ca   : > { %1553 = vmatprep.subr.bf16.mxu0 %v1595_v2 }
 0x1cd   : > { %1555 = vmatpush3.bf16.msra.mxu0 %v1554_v46 }
 0x1ce   : > { %1556 = vmatprep.subr.bf16.mxu0 %v1595_v2 }
 0x1d1   : > { %1558 = vmatpush3.bf16.msra.mxu0 %v1557_v14 }
 0x1d2   : > { %1559 = vmatprep.subr.bf16.mxu0 %v1595_v2 }
 0x1d5   : > { %1561 = vmatpush3.bf16.msra.mxu0 %v1560_v50 }
 0x1d6   : > { %1562 = vmatprep.subr.bf16.mxu0 %v1595_v2 }
 0x1d9   : > { %1564 = vmatpush3.bf16.msra.mxu0 %v1563_v53 }
 0x1da   : > { %1565 = vmatprep.subr.bf16.mxu0 %v1595_v2 }
 0x1dd   : > { %1567 = vmatpush3.bf16.msra.mxu0 %v1566_v56 }
 0x1de   : > { %1568 = vmatprep.subr.bf16.mxu0 %v1595_v2 }
 0x1e1   : > { %1570 = vmatpush3.bf16.msra.mxu0 %v1569_v59 }
 0x1e2   : > { %1571 = vmatprep.subr.bf16.mxu0 %v1595_v2 }
 0x1e5   : > { %1573 = vmatpush3.bf16.msra.mxu0 %v1572_v62 }
 0x294   : > { %v770_v0 = vpop.f32.mrb[2].mxu0 }
 0x295   : > { %v771_v1 = vadd.f32 %v1214_v63, %v770_v0  ;;  %v1380_v3 = vpop.f32.mrb[3].mxu0 }
 0x297   : > { %1585 = vtanh.f32 %v771_v1 }
 0x29a   : > { %v960_v2 = vpop.f32.mrb[4].mxu0  ;;  %v1030_v6 = vpop.f32.mrb[4].mxu1 }
 0x29b   : > { %v1031_v7 = vadd.f32 %v1030_v6, %v960_v2  ;;  %v1398_v8 = vpop.f32.mrb[5].mxu0  ;;  %v1433_v9 = vpop.f32.mrb[5].mxu1 }
 0x29d   : > { %v1040_v10 = vadd.f32 %v1218_v5, %v1031_v7 }
 0x29f   : > { %v1041_v11 = vmax.f32 %v1040_v10, 0.0 }
 0x2a1   : > { %v1586_v12 = vpop.eup %1585  ;;  %1467 = vmatmul.mubr.f32.vlgmr.msra.gmra.mrb[6].mxu0 %v1041_v11 }
 0x2a2   : > { %775 = vst [vmem:[%s496_s26] sm:$0xff] %v1586_v12 }
 0x374   : > { %v1114_v15 = vpop.f32.mrb[6].mxu0 }
 0x375   : > { %v1115_v16 = vadd.f32 %v1219_v13, %v1114_v15  ;;  %v1468_v17 = vpop.f32.mrb[7].mxu0 }
 0x377   : > { %1118 = vst [vmem:[%s500_s30] sm:$0xff] %v1115_v16 }
 0x378 PF: > { %s26_s18 = sadd.s32 1, %s1593_s18  }
 0x379   : > { %p23_p4 = scmp.ge.s32.totalorder %s26_s18, 4  }
 0x37b   :  { %25 = sbr.rel (!%p23_p4) target bundleno = 1 (0x1), region = 118 }

</bundles_post_ra>
